<compile_context>
chip_gen: v7x
topology: tpu7x:2x2x1
jax: 0.10.0
libtpu: 0.0.40
codegen_flags: <defaults>
</compile_context>

<pallas_src>
import functools

import jax
import jax.numpy as jnp
from jax.experimental import pallas as pl
from jax.experimental.pallas import tpu as pltpu

INPUT_DIM = 32
HIDDEN1 = 64
HIDDEN2 = 32
OUTPUT_DIM = 4      # > 1 -> PyTorch module applies Sigmoid (Softmax only when == 1)
BATCH = 8


def dnn_kernel(x_ref, w1_ref, b1_ref, w2_ref, b2_ref, w3_ref, b3_ref, o_ref,
               *, output_dim):
    # x tile arrives in f32; cast to bf16 in-kernel (native MXU operand dtype) so
    # the wrapper doesn't need a separate cast op / extra HBM round-trip.
    x = x_ref[...].astype(jnp.bfloat16)

    # Linear(input_dim, 64) + ReLU -- bf16 operands, f32 accumulation.
    h1 = jnp.dot(x, w1_ref[...], preferred_element_type=jnp.float32) + b1_ref[...]
    h1 = jnp.maximum(h1, 0.0)

    # Dropout(0.2): identity at inference (module.eval() semantics).
    # TODO(synk): training-mode dropout would use pltpu.prng_seed/prng_random_bits
    #             plus 1/(1-p) scaling.

    # Linear(64, 32) + ReLU
    h2 = jnp.dot(h1.astype(jnp.bfloat16), w2_ref[...],
                 preferred_element_type=jnp.float32) + b2_ref[...]
    h2 = jnp.maximum(h2, 0.0)

    # Linear(32, output_dim)
    logits = jnp.dot(h2.astype(jnp.bfloat16), w3_ref[...],
                     preferred_element_type=jnp.float32) + b3_ref[...]

    if output_dim > 1:
        # Numerically-stable sigmoid: one EUP op (tanh) + two VPU ops, no select,
        # no approximate-reciprocal error.
        o_ref[...] = 0.5 * jnp.tanh(0.5 * logits) + 0.5
    else:
        # Softmax(dim=1): degenerate (all ones) when output_dim == 1, matching PyTorch.
        m = jnp.max(logits, axis=1, keepdims=True)
        e = jnp.exp(logits - m)
        o_ref[...] = e / jnp.sum(e, axis=1, keepdims=True)


def prepare_params(params):
    """One-time host prep (hoisted out of the forward path): weights -> bf16
    MXU operands; biases stay f32 with shape (1, out_features)."""
    w1, b1, w2, b2, w3, b3 = params
    return (w1.astype(jnp.bfloat16), b1,
            w2.astype(jnp.bfloat16), b2,
            w3.astype(jnp.bfloat16), b3)


def _round_up(n, m):
    return ((n + m - 1) // m) * m


def _choose_tile_m(batch):
    """Rows per grid step: cover tiny batches with one minimal (8-row-aligned)
    tile; for large batches keep tiles <= 512 rows and the grid >= 2 steps so
    v7x's second TensorCore gets work (no-op on single-TC v5e/v6e)."""
    b8 = _round_up(batch, 8)
    if b8 <= 16:
        return b8
    return min(512, _round_up((b8 + 1) // 2, 8))


@functools.partial(jax.jit, static_argnames=("output_dim",))
def simple_dnn_forward(x, prepared_params, output_dim=OUTPUT_DIM):
    w1, b1, w2, b2, w3, b3 = prepared_params
    batch, in_dim = x.shape

    tile_m = _choose_tile_m(batch)
    b_pad = _round_up(batch, tile_m)
    if b_pad != batch:
        x = jnp.pad(x, ((0, b_pad - batch), (0, 0)))

    grid = (b_pad // tile_m,)

    # Weights / biases: constant index_map -> fetched once, VMEM-resident across
    # all batch tiles; single-buffered since they never change per grid step.
    const = lambda shape: pl.BlockSpec(shape, lambda i: tuple(0 for _ in shape),
                                       pipeline_mode=pl.Buffered(1))

    out = pl.pallas_call(
        functools.partial(dnn_kernel, output_dim=output_dim),
        out_shape=jax.ShapeDtypeStruct((b_pad, output_dim), jnp.float32),
        grid=grid,
        in_specs=[
            pl.BlockSpec((tile_m, in_dim), lambda i: (i, 0)),   # x (batch-tiled)
            const(w1.shape), const(b1.shape),                   # layer 1
            const(w2.shape), const(b2.shape),                   # layer 2
            const(w3.shape), const(b3.shape),                   # layer 3
        ],
        out_specs=pl.BlockSpec((tile_m, output_dim), lambda i: (i, 0)),
        compiler_params=pltpu.CompilerParams(
            # batch tiles are independent -> shard across TensorCores on v7x
            dimension_semantics=("parallel",)),
    )(x, w1, b1, w2, b2, w3, b3)

    return out[:batch] if b_pad != batch else out


def init_params(key, input_dim=INPUT_DIM, output_dim=OUTPUT_DIM):
    """Deterministic synthetic init (PyTorch-style uniform(-1/sqrt(fan_in), +))."""
    def linear(k, fan_in, fan_out):
        kw, kb = jax.random.split(k)
        bound = 1.0 / jnp.sqrt(fan_in)
        w = jax.random.uniform(kw, (fan_in, fan_out), jnp.float32, -bound, bound)
        b = jax.random.uniform(kb, (1, fan_out), jnp.float32, -bound, bound)
        return w, b

    k1, k2, k3 = jax.random.split(key, 3)
    w1, b1 = linear(k1, input_dim, HIDDEN1)
    w2, b2 = linear(k2, HIDDEN1, HIDDEN2)
    w3, b3 = linear(k3, HIDDEN2, output_dim)
    return (w1, b1, w2, b2, w3, b3)


def reference_forward(x, params, output_dim=OUTPUT_DIM):
    """Pure-JAX f32 reference (eval-mode dropout = identity)."""
    w1, b1, w2, b2, w3, b3 = params
    h = jnp.maximum(x @ w1 + b1, 0.0)
    h = jnp.maximum(h @ w2 + b2, 0.0)
    logits = h @ w3 + b3
    if output_dim > 1:
        return jax.nn.sigmoid(logits)
    return jax.nn.softmax(logits, axis=1)


if __name__ == "__main__":
    key = jax.random.PRNGKey(0)
    kx, kp = jax.random.split(key)

    x = jax.random.normal(kx, (BATCH, INPUT_DIM), jnp.float32)
    params = init_params(kp)
    prepared = prepare_params(params)   # one-time: bf16 weight cast, off the hot path

    out = simple_dnn_forward(x, prepared)
    out = jax.block_until_ready(out)

    ref = reference_forward(x, params)
    assert out.shape == (BATCH, OUTPUT_DIM), out.shape
    # bf16 matmul operands vs the pure-f32 reference -> slightly loosened tolerance;
    # the exact tanh-based sigmoid keeps absolute error well below this.
    assert jnp.allclose(out, ref, atol=2e-2, rtol=2e-2), "mismatch vs pure-JAX reference"

    print("KERNEL_OK")
</pallas_src>

<mosaic_0001>
module attributes {stable_mosaic.version = 11 : i64} {
  func.func @dnn_kernel(%arg0: i32, %arg1: memref<8x32xf32, #tpu.memory_space<vmem>>, %arg2: memref<32x64xbf16, #tpu.memory_space<vmem>>, %arg3: memref<1x64xf32, #tpu.memory_space<vmem>>, %arg4: memref<64x32xbf16, #tpu.memory_space<vmem>>, %arg5: memref<1x32xf32, #tpu.memory_space<vmem>>, %arg6: memref<32x4xbf16, #tpu.memory_space<vmem>>, %arg7: memref<1x4xf32, #tpu.memory_space<vmem>>, %arg8: memref<8x4xf32, #tpu.memory_space<vmem>>) attributes {dimension_semantics = [#tpu.dimension_semantics<parallel>], iteration_bounds = array<i64: 1>, scalar_prefetch = 0 : i64, scratch_operands = 0 : i64, tpu.core_type = #tpu.core_type<tc>, window_params = [{transform_indices = @transform_0, window_bounds = array<i64: 8, 32>}, {pipeline_mode = #tpu.pipeline_mode<synchronous>, transform_indices = @transform_1, window_bounds = array<i64: 32, 64>}, {pipeline_mode = #tpu.pipeline_mode<synchronous>, transform_indices = @transform_2, window_bounds = array<i64: 1, 64>}, {pipeline_mode = #tpu.pipeline_mode<synchronous>, transform_indices = @transform_3, window_bounds = array<i64: 64, 32>}, {pipeline_mode = #tpu.pipeline_mode<synchronous>, transform_indices = @transform_4, window_bounds = array<i64: 1, 32>}, {pipeline_mode = #tpu.pipeline_mode<synchronous>, transform_indices = @transform_5, window_bounds = array<i64: 32, 4>}, {pipeline_mode = #tpu.pipeline_mode<synchronous>, transform_indices = @transform_6, window_bounds = array<i64: 1, 4>}, {transform_indices = @transform_7, window_bounds = array<i64: 8, 4>}]} {
    %c0 = arith.constant 0 : index
    %c0_0 = arith.constant 0 : index
    %0 = vector.load %arg1[%c0, %c0_0] : memref<8x32xf32, #tpu.memory_space<vmem>>, vector<8x32xf32>
    %1 = arith.truncf %0 : vector<8x32xf32> to vector<8x32xbf16>
    %c0_1 = arith.constant 0 : index
    %c0_2 = arith.constant 0 : index
    %2 = vector.load %arg2[%c0_1, %c0_2] : memref<32x64xbf16, #tpu.memory_space<vmem>>, vector<32x64xbf16>
    %cst = arith.constant dense<0.000000e+00> : vector<8x64xf32>
    %3 = tpu.matmul %1, %2, %cst {dimension_numbers = #tpu.dot_dimension_numbers<[1], [0], [0], [1], [0, 0, 1, 1], [], []>} : vector<8x32xbf16>, vector<32x64xbf16>, vector<8x64xf32> -> vector<8x64xf32>
    %c0_3 = arith.constant 0 : index
    %c0_4 = arith.constant 0 : index
    %4 = vector.load %arg3[%c0_3, %c0_4] : memref<1x64xf32, #tpu.memory_space<vmem>>, vector<1x64xf32>
    %5 = vector.broadcast %4 : vector<1x64xf32> to vector<8x64xf32>
    %6 = arith.addf %3, %5 : vector<8x64xf32>
    %cst_5 = arith.constant 0.000000e+00 : f32
    %7 = vector.broadcast %cst_5 : f32 to vector<8x64xf32>
    %8 = arith.maximumf %6, %7 : vector<8x64xf32>
    %9 = arith.truncf %8 : vector<8x64xf32> to vector<8x64xbf16>
    %c0_6 = arith.constant 0 : index
    %c0_7 = arith.constant 0 : index
    %10 = vector.load %arg4[%c0_6, %c0_7] : memref<64x32xbf16, #tpu.memory_space<vmem>>, vector<64x32xbf16>
    %cst_8 = arith.constant dense<0.000000e+00> : vector<8x32xf32>
    %11 = tpu.matmul %9, %10, %cst_8 {dimension_numbers = #tpu.dot_dimension_numbers<[1], [0], [0], [1], [0, 0, 1, 1], [], []>} : vector<8x64xbf16>, vector<64x32xbf16>, vector<8x32xf32> -> vector<8x32xf32>
    %c0_9 = arith.constant 0 : index
    %c0_10 = arith.constant 0 : index
    %12 = vector.load %arg5[%c0_9, %c0_10] : memref<1x32xf32, #tpu.memory_space<vmem>>, vector<1x32xf32>
    %13 = vector.broadcast %12 : vector<1x32xf32> to vector<8x32xf32>
    %14 = arith.addf %11, %13 : vector<8x32xf32>
    %cst_11 = arith.constant 0.000000e+00 : f32
    %15 = vector.broadcast %cst_11 : f32 to vector<8x32xf32>
    %16 = arith.maximumf %14, %15 : vector<8x32xf32>
    %17 = arith.truncf %16 : vector<8x32xf32> to vector<8x32xbf16>
    %c0_12 = arith.constant 0 : index
    %c0_13 = arith.constant 0 : index
    %18 = vector.load %arg6[%c0_12, %c0_13] : memref<32x4xbf16, #tpu.memory_space<vmem>>, vector<32x4xbf16>
    %cst_14 = arith.constant dense<0.000000e+00> : vector<8x4xf32>
    %19 = tpu.matmul %17, %18, %cst_14 {dimension_numbers = #tpu.dot_dimension_numbers<[1], [0], [0], [1], [0, 0, 1, 1], [], []>} : vector<8x32xbf16>, vector<32x4xbf16>, vector<8x4xf32> -> vector<8x4xf32>
    %c0_15 = arith.constant 0 : index
    %c0_16 = arith.constant 0 : index
    %20 = vector.load %arg7[%c0_15, %c0_16] : memref<1x4xf32, #tpu.memory_space<vmem>>, vector<1x4xf32>
    %21 = vector.broadcast %20 : vector<1x4xf32> to vector<8x4xf32>
    %22 = arith.addf %19, %21 : vector<8x4xf32>
    %cst_17 = arith.constant 5.000000e-01 : f32
    %23 = vector.broadcast %cst_17 : f32 to vector<8x4xf32>
    %24 = arith.mulf %23, %22 : vector<8x4xf32>
    %25 = math.tanh %24 : vector<8x4xf32>
    %cst_18 = arith.constant 5.000000e-01 : f32
    %26 = vector.broadcast %cst_18 : f32 to vector<8x4xf32>
    %27 = arith.mulf %26, %25 : vector<8x4xf32>
    %cst_19 = arith.constant 5.000000e-01 : f32
    %28 = vector.broadcast %cst_19 : f32 to vector<8x4xf32>
    %29 = arith.addf %27, %28 : vector<8x4xf32>
    %c0_20 = arith.constant 0 : index
    %c0_21 = arith.constant 0 : index
    %30 = vector.load %arg8[%c0_20, %c0_21] : memref<8x4xf32, #tpu.memory_space<vmem>>, vector<8x4xf32>
    tpu.vector_store %arg8[%c0_20, %c0_21], %29 {strides = array<i32>} : memref<8x4xf32, #tpu.memory_space<vmem>>, vector<8x4xf32>,
    return
  }
  func.func @transform_0(%arg0: i32) -> (i32, i32) {
    %c0_i32 = arith.constant 0 : i32
    %c0_i32_0 = arith.constant 0 : i32
    return %arg0, %c0_i32 : i32, i32
  }
  func.func @transform_1(%arg0: i32) -> (i32, i32) {
    %c0_i32 = arith.constant 0 : i32
    %c0_i32_0 = arith.constant 0 : i32
    %c0_i32_1 = arith.constant 0 : i32
    return %c0_i32, %c0_i32_0 : i32, i32
  }
  func.func @transform_2(%arg0: i32) -> (i32, i32) {
    %c0_i32 = arith.constant 0 : i32
    %c0_i32_0 = arith.constant 0 : i32
    %c0_i32_1 = arith.constant 0 : i32
    return %c0_i32, %c0_i32_0 : i32, i32
  }
  func.func @transform_3(%arg0: i32) -> (i32, i32) {
    %c0_i32 = arith.constant 0 : i32
    %c0_i32_0 = arith.constant 0 : i32
    %c0_i32_1 = arith.constant 0 : i32
    return %c0_i32, %c0_i32_0 : i32, i32
  }
  func.func @transform_4(%arg0: i32) -> (i32, i32) {
    %c0_i32 = arith.constant 0 : i32
    %c0_i32_0 = arith.constant 0 : i32
    %c0_i32_1 = arith.constant 0 : i32
    return %c0_i32, %c0_i32_0 : i32, i32
  }
  func.func @transform_5(%arg0: i32) -> (i32, i32) {
    %c0_i32 = arith.constant 0 : i32
    %c0_i32_0 = arith.constant 0 : i32
    %c0_i32_1 = arith.constant 0 : i32
    return %c0_i32, %c0_i32_0 : i32, i32
  }
  func.func @transform_6(%arg0: i32) -> (i32, i32) {
    %c0_i32 = arith.constant 0 : i32
    %c0_i32_0 = arith.constant 0 : i32
    %c0_i32_1 = arith.constant 0 : i32
    return %c0_i32, %c0_i32_0 : i32, i32
  }
  func.func @transform_7(%arg0: i32) -> (i32, i32) {
    %c0_i32 = arith.constant 0 : i32
    %c0_i32_0 = arith.constant 0 : i32
    return %arg0, %c0_i32 : i32, i32
  }
}

</mosaic_0001>

<bundles_post_ra>
// kernel: simple_dnn_forward.1
= control target key start
LH: loop header
LB: loop body
LE: loop exit
PB: predicated region body
PF: predicated region fallthrough
CT: control target
= control target key end

     0   :  { %v324_v0 = vmov 0.0   ;;  %vm325_vm0 = vmmov 0   ;;  %vm52_vm1 = vcmask 261120   ;;  %vm137_vm2 = vcmask 523264   ;;  %s410_s1 = inlined_call_operand.vmem [shape: bf16[32,64], index: 1, kind: input, shape index: {}]   ;;  %s411_s0 = inlined_call_operand.vmem [shape: f32[8,32], index: 0, kind: input, shape index: {}]   ;;  %s412_s3 = inlined_call_operand.vmem [shape: bf16[64,32], index: 3, kind: input, shape index: {}]   ;;  %s413_s5 = inlined_call_operand.vmem [shape: bf16[32,4], index: 5, kind: input, shape index: {}]   ;;  %s414_s2 = inlined_call_operand.vmem [shape: f32[1,64], index: 2, kind: input, shape index: {}]   ;;  %s415_s4 = inlined_call_operand.vmem [shape: f32[1,32], index: 4, kind: input, shape index: {}]   ;;  %s416_s6 = inlined_call_operand.vmem [shape: f32[1,4], index: 6, kind: input, shape index: {}]   ;;  %s417_s7 = inlined_call_operand.vmem [shape: f32[8,4], index: 7, kind: output, shape index: {}]  }
   0x1   :  { %284 = vmatprep.subr.bf16.mxu0 %v324_v0  ;;  %v314_v1 = vld [vmem:[%s410_s1] sm:$0xff]   ;;  %288 = vmatprep.mubr.msk.bf16.mxu0 %vm325_vm0, %v324_v0  ;;  %v315_v2 = vld [vmem:[%s410_s1 + $0x8] sm:$0xff]   ;;  %v318_v7 = vld [vmem:[%s412_s3 + $0x10] sm:$0xff]   ;;  %vm253_vm3 = vcmask 31744  }
   0x2   :  { %292 = vmatprep.subr.bf16.mxu1 %v324_v0  ;;  %300 = vmatprep.mubr.msk.bf16.mxu1 %vm325_vm0, %v324_v0  ;;  %v27_v3 = vld [vmem:[%s411_s0] sm:$0xff]  ;;  %v317_v5 = vld [vmem:[%s412_s3 + $0x8] sm:$0xff]   ;;  %v319_v8 = vld [vmem:[%s412_s3 + $0x18] sm:$0xff]  }
   0x3   :  { %285 = vmatpush3.bf16.msra.mxu0 %v314_v1  ;;  %v316_v4 = vld [vmem:[%s412_s3] sm:$0xff]   ;;  %v28_v6 = vpack.c.bf16 %v27_v3, %v27_v3  ;;  %v321_v18 = vld [vmem:[%s413_s5 + $0x8] sm:$0xff]  }
   0x4   :  { %286 = vmatprep.subr.bf16.mxu0 %v324_v0  ;;  %293 = vmatpush3.bf16.msra.mxu1 %v316_v4  ;;  %v320_v9 = vld [vmem:[%s413_s5] sm:$0xff]  }
   0x5   :  { %294 = vmatprep.subr.bf16.mxu1 %v324_v0  ;;  %v259_v10 = vld [vmem:[%s414_s2] ss:$0 sm:$0xff] }
   0x6   :  { %v263_v19 = vld [vmem:[%s415_s4] ss:$0 sm:$0xff] }
   0x7   :  { %287 = vmatpush3.bf16.msra.mxu0 %v315_v2  ;;  %v269_v27 = vld [vmem:[%s416_s6] ss:$0 sm:$0xff] }
   0x8   :  { %304 = vmatprep.subr.bf16.mxu0 %v324_v0  ;;  %295 = vmatpush3.bf16.msra.mxu1 %v317_v5 }
   0x9   :  { %296 = vmatprep.subr.bf16.mxu1 %v324_v0 }
   0xa   :  { %289 = vmatmul.mubr.msk.bf16.vlgmr.msra.gmra.mrb[0].mxu0 %vm52_vm1, %v28_v6 }
   0xb   :  { %308 = vmatprep.mubr.msk.bf16.mxu0 %vm325_vm0, %v324_v0  ;;  %305 = vmatpush3.bf16.msra.mxu0 %v320_v9 }
   0xc   :  { %297 = vmatpush3.bf16.msra.mxu1 %v318_v7  ;;  %306 = vmatprep.subr.bf16.mxu0 %v324_v0 }
   0xd   :  { %298 = vmatprep.subr.bf16.mxu1 %v324_v0 }
   0xf   :  { %307 = vmatpush3.bf16.msra.mxu0 %v321_v18 }
  0x10   :  { %299 = vmatpush3.bf16.msra.mxu1 %v319_v8 }
  0xdd   :  { %v90_v11 = vpop.f32.mrb[0].mxu0 }
  0xde   :  { %v91_v12 = vadd.f32 %v259_v10, %v90_v11  ;;  %v290_v13 = vpop.f32.mrb[1].mxu0 }
  0xdf   :  { %v93_v14 = vpop.f32.mrb[2].mxu0 }
  0xe0   :  { %v96_v15 = vmax.f32 %v91_v12, 0.0  ;;  %v291_v16 = vpop.f32.mrb[3].mxu0 }
  0xe2   :  { %v97_v17 = vpack.c.bf16 %v96_v15, %v96_v15 }
  0xe4   :  { %301 = vmatmul.mubr.msk.bf16.vlgmr.msra.gmra.mrb[0].mxu1 %vm137_vm2, %v97_v17 }
 0x1b7   :  { %v175_v20 = vpop.f32.mrb[0].mxu1 }
 0x1b8   :  { %v176_v21 = vadd.f32 %v263_v19, %v175_v20  ;;  %v302_v22 = vpop.f32.mrb[1].mxu1 }
 0x1b9   :  { %v178_v23 = vpop.f32.mrb[2].mxu1 }
 0x1ba   :  { %v181_v24 = vmax.f32 %v176_v21, 0.0  ;;  %v303_v25 = vpop.f32.mrb[3].mxu1 }
 0x1bc   :  { %v182_v26 = vpack.c.bf16 %v181_v24, %v181_v24 }
 0x1be   :  { %309 = vmatmul.mubr.msk.bf16.vlgmr.msra.gmra.mrb[4].mxu0 %vm52_vm1, %v182_v26 }
 0x291   :  { %v243_v28 = vpop.f32.mrb[4].mxu0 }
 0x292   :  { %v244_v29 = vadd.f32 %v269_v27, %v243_v28  ;;  %v310_v30 = vpop.f32.mrb[5].mxu0 }
 0x293   :  { %v246_v31 = vpop.f32.mrb[6].mxu0 }
 0x294   :  { %v249_v32 = vmul.f32 0.5, %v244_v29  ;;  %v311_v33 = vpop.f32.mrb[7].mxu0 }
 0x296   :  { %322 = vtanh.f32 %v249_v32 }
 0x2a0   :  { %v323_v34 = vpop.eup %322 }
 0x2a1   :  { %v251_v35 = vmul.f32 0.5, %v323_v34 }
 0x2a3   :  { %v252_v36 = vadd.f32 0.5, %v251_v35 }
 0x2a5   :  { %254 = vst.msk [vmem:[%s417_s7] sm:$0xff] %vm253_vm3, %v252_v36 }

</bundles_post_ra>
